<compile_context>
chip_gen: v5e
topology: v5e:2x2
jax: 0.10.0
libtpu: 0.0.40
codegen_flags: <defaults>
</compile_context>

<pallas_src>
import jax
import jax.numpy as jnp
from jax.experimental import pallas as pl
from jax.experimental.pallas import tpu as pltpu

_EPS = 1e-5


def _instance_norm_kernel(x_ref, g_ref, b_ref, o_ref):
    # x_ref : (TR, HW)  one tile of (n, c)-rows, full spatial extent
    # g_ref : (TR, 1)   per-row gamma (broadcast from the per-channel weight)
    # b_ref : (TR, 1)   per-row beta
    x = x_ref[...].astype(jnp.float32)
    mean = jnp.mean(x, axis=-1, keepdims=True)
    xc = x - mean
    var = jnp.mean(xc * xc, axis=-1, keepdims=True)          # biased variance
    inv = jax.lax.rsqrt(var + _EPS)
    # Fold the affine into one per-row scale/shift -> write path is 1 mul + 1 add.
    scale = inv * g_ref[...].astype(jnp.float32)              # (TR, 1)
    shift = b_ref[...].astype(jnp.float32) - mean * scale     # (TR, 1)
    o_ref[...] = (x * scale + shift).astype(o_ref.dtype)


def _vmem_budget():
    """Returns (data_tile_budget_bytes, vmem_limit_bytes) per TPU generation."""
    try:
        kind = jax.devices()[0].device_kind.lower()
    except Exception:
        kind = ""
    if "v7" in kind or "7x" in kind:
        # v7x: 64 MiB physical VMEM per TensorCore -> keep headroom.
        return 32 * 1024 * 1024, 48 * 1024 * 1024
    if "v5" in kind or "v6" in kind:
        # v5e / v6e: 128 MiB physical VMEM; raise the scoped limit above default.
        return 72 * 1024 * 1024, 100 * 1024 * 1024
    # Unknown hardware: be conservative.
    return 24 * 1024 * 1024, 48 * 1024 * 1024


def _select_tile_rows(nc, hw, itemsize, data_budget_bytes):
    """Largest row tile (multiple of 8, or full extent) fitting the VMEM budget."""
    # Pipeline footprint per row ~= 2 (double-buffer) * (x_in + x_out + gamma + beta);
    # the (tr, 1) gamma/beta tiles pad to 128 lanes in VMEM.
    per_row = 2 * itemsize * (2 * hw + 2 * 128)
    tr = max(8, (int(data_budget_bytes // per_row) // 8) * 8)
    if nc > 8:
        # Keep at least two grid steps so megacore (v7x) / pipelining has work.
        half = -(-nc // 2)
        tr = min(tr, ((half + 7) // 8) * 8)
    if tr >= nc:
        return nc          # full-extent block (allowed even when nc % 8 != 0)
    return tr


def spade_no_spadenorm_forward(x, gamma, beta, *, tile_rows=None):
    """Instance-norm (affine) forward, matching SPADE_noSPADENorm('instance', C).

    x     : (N, C, H, W)  float32 or bfloat16
    gamma : (C,)          float32  (InstanceNorm2d.weight)
    beta  : (C,)          float32  (InstanceNorm2d.bias)
    returns (N, C, H, W)  same dtype as x
    """
    N, C, H, W = x.shape
    NC, HW = N * C, H * W
    itemsize = jnp.dtype(x.dtype).itemsize

    data_budget, vmem_limit = _vmem_budget()
    if tile_rows is None:
        tr = _select_tile_rows(NC, HW, itemsize, data_budget)
    else:
        tr = min(tile_rows, NC)

    x2d = x.reshape(NC, HW)
    # Broadcast per-channel affine params to per-(n, c) rows, shape (NC, 1), f32.
    g2d = jnp.tile(gamma.reshape(1, C), (N, 1)).reshape(NC, 1)
    b2d = jnp.tile(beta.reshape(1, C), (N, 1)).reshape(NC, 1)

    grid = (pl.cdiv(NC, tr),)

    # Note: for HW not a multiple of 128 the full-extent lane block still
    # compiles (masked stores); lane-repacking only matters for tiny H*W.
    out2d = pl.pallas_call(
        _instance_norm_kernel,
        out_shape=jax.ShapeDtypeStruct((NC, HW), x.dtype),
        grid_spec=pltpu.PrefetchScalarGridSpec(
            num_scalar_prefetch=0,
            grid=grid,
            in_specs=[
                pl.BlockSpec((tr, HW), lambda i: (i, 0)),
                pl.BlockSpec((tr, 1), lambda i: (i, 0)),
                pl.BlockSpec((tr, 1), lambda i: (i, 0)),
            ],
            out_specs=pl.BlockSpec((tr, HW), lambda i: (i, 0)),
        ),
        compiler_params=pltpu.CompilerParams(
            dimension_semantics=("parallel",),
            vmem_limit_bytes=vmem_limit,
        ),
    )(x2d, g2d, b2d)

    return out2d.reshape(N, C, H, W)


def _reference_instance_norm(x, gamma, beta):
    # Pure-JAX reference matching torch.nn.InstanceNorm2d(affine=True).
    xf = x.astype(jnp.float32)
    mean = jnp.mean(xf, axis=(2, 3), keepdims=True)
    var = jnp.mean((xf - mean) ** 2, axis=(2, 3), keepdims=True)
    y = (xf - mean) * jax.lax.rsqrt(var + _EPS)
    y = y * gamma.reshape(1, -1, 1, 1) + beta.reshape(1, -1, 1, 1)
    return y.astype(x.dtype)


if __name__ == "__main__":
    key = jax.random.PRNGKey(0)
    kx, kg, kb = jax.random.split(key, 3)

    N, C, H, W = 2, 4, 16, 16          # norm_nc = C = 4
    x = jax.random.normal(kx, (N, C, H, W), dtype=jnp.float32)

    # Deterministic, non-trivial affine params (PyTorch default is ones/zeros).
    gamma = 1.0 + 0.1 * jax.random.normal(kg, (C,), dtype=jnp.float32)
    beta = 0.1 * jax.random.normal(kb, (C,), dtype=jnp.float32)

    out = spade_no_spadenorm_forward(x, gamma, beta)
    out = jax.block_until_ready(out)

    ref = _reference_instance_norm(x, gamma, beta)
    assert out.shape == (N, C, H, W)
    assert jnp.allclose(out, ref, atol=1e-5, rtol=1e-5), "mismatch vs reference"

    print("KERNEL_OK")
</pallas_src>

<mosaic_0001>
module attributes {stable_mosaic.version = 11 : i64} {
  func.func @_instance_norm_kernel(%arg0: i32, %arg1: memref<8x256xf32, #tpu.memory_space<vmem>>, %arg2: memref<8x1xf32, #tpu.memory_space<vmem>>, %arg3: memref<8x1xf32, #tpu.memory_space<vmem>>, %arg4: memref<8x256xf32, #tpu.memory_space<vmem>>) attributes {dimension_semantics = [#tpu.dimension_semantics<parallel>], iteration_bounds = array<i64: 1>, scalar_prefetch = 0 : i64, scratch_operands = 0 : i64, tpu.core_type = #tpu.core_type<tc>, window_params = [{transform_indices = @transform_0, window_bounds = array<i64: 8, 256>}, {transform_indices = @transform_1, window_bounds = array<i64: 8, 1>}, {transform_indices = @transform_2, window_bounds = array<i64: 8, 1>}, {transform_indices = @transform_3, window_bounds = array<i64: 8, 256>}]} {
    %c0 = arith.constant 0 : index
    %c0_0 = arith.constant 0 : index
    %0 = vector.load %arg1[%c0, %c0_0] : memref<8x256xf32, #tpu.memory_space<vmem>>, vector<8x256xf32>
    %cst = arith.constant dense<0.000000e+00> : vector<8xf32>
    %1 = vector.multi_reduction <add>, %0, %cst [1] : vector<8x256xf32> to vector<8xf32>
    %2 = vector.shape_cast %1 : vector<8xf32> to vector<8x1xf32>
    %cst_1 = arith.constant 2.560000e+02 : f32
    %3 = vector.broadcast %cst_1 : f32 to vector<8x1xf32>
    %4 = arith.divf %2, %3 : vector<8x1xf32>
    %5 = vector.broadcast %4 : vector<8x1xf32> to vector<8x256xf32>
    %6 = arith.subf %0, %5 : vector<8x256xf32>
    %7 = arith.mulf %6, %6 : vector<8x256xf32>
    %cst_2 = arith.constant dense<0.000000e+00> : vector<8xf32>
    %8 = vector.multi_reduction <add>, %7, %cst_2 [1] : vector<8x256xf32> to vector<8xf32>
    %9 = vector.shape_cast %8 : vector<8xf32> to vector<8x1xf32>
    %cst_3 = arith.constant 2.560000e+02 : f32
    %10 = vector.broadcast %cst_3 : f32 to vector<8x1xf32>
    %11 = arith.divf %9, %10 : vector<8x1xf32>
    %cst_4 = arith.constant 9.99999974E-6 : f32
    %12 = vector.broadcast %cst_4 : f32 to vector<8x1xf32>
    %13 = arith.addf %11, %12 : vector<8x1xf32>
    %14 = math.rsqrt %13 : vector<8x1xf32>
    %c0_5 = arith.constant 0 : index
    %c0_6 = arith.constant 0 : index
    %15 = vector.load %arg2[%c0_5, %c0_6] : memref<8x1xf32, #tpu.memory_space<vmem>>, vector<8x1xf32>
    %16 = arith.mulf %14, %15 : vector<8x1xf32>
    %c0_7 = arith.constant 0 : index
    %c0_8 = arith.constant 0 : index
    %17 = vector.load %arg3[%c0_7, %c0_8] : memref<8x1xf32, #tpu.memory_space<vmem>>, vector<8x1xf32>
    %18 = arith.mulf %4, %16 : vector<8x1xf32>
    %19 = arith.subf %17, %18 : vector<8x1xf32>
    %20 = vector.broadcast %16 : vector<8x1xf32> to vector<8x256xf32>
    %21 = arith.mulf %0, %20 : vector<8x256xf32>
    %22 = vector.broadcast %19 : vector<8x1xf32> to vector<8x256xf32>
    %23 = arith.addf %21, %22 : vector<8x256xf32>
    %c0_9 = arith.constant 0 : index
    %c0_10 = arith.constant 0 : index
    %24 = vector.load %arg4[%c0_9, %c0_10] : memref<8x256xf32, #tpu.memory_space<vmem>>, vector<8x256xf32>
    tpu.vector_store %arg4[%c0_9, %c0_10], %23 {strides = array<i32>} : memref<8x256xf32, #tpu.memory_space<vmem>>, vector<8x256xf32>,
    return
  }
  func.func @transform_0(%arg0: i32) -> (i32, i32) {
    %c0_i32 = arith.constant 0 : i32
    %c0_i32_0 = arith.constant 0 : i32
    return %arg0, %c0_i32 : i32, i32
  }
  func.func @transform_1(%arg0: i32) -> (i32, i32) {
    %c0_i32 = arith.constant 0 : i32
    %c0_i32_0 = arith.constant 0 : i32
    return %arg0, %c0_i32 : i32, i32
  }
  func.func @transform_2(%arg0: i32) -> (i32, i32) {
    %c0_i32 = arith.constant 0 : i32
    %c0_i32_0 = arith.constant 0 : i32
    return %arg0, %c0_i32 : i32, i32
  }
  func.func @transform_3(%arg0: i32) -> (i32, i32) {
    %c0_i32 = arith.constant 0 : i32
    %c0_i32_0 = arith.constant 0 : i32
    return %arg0, %c0_i32 : i32, i32
  }
}

</mosaic_0001>

<bundles_post_ra>
// kernel: tpu_custom_call.1
= control target key start
LH: loop header
LB: loop body
LE: loop exit
PB: predicated region body
PF: predicated region fallthrough
CT: control target
= control target key end

     0   :  { %s157_s0 = inlined_call_operand.vmem [shape: f32[8,256], index: 0, kind: input, shape index: {}]   ;;  %s158_s1 = inlined_call_operand.vmem [shape: f32[8,1], index: 1, kind: input, shape index: {}]   ;;  %s159_s2 = inlined_call_operand.vmem [shape: f32[8,1], index: 2, kind: input, shape index: {}]   ;;  %s160_s3 = inlined_call_operand.hbm [shape: f32[8,256], index: 3, kind: output, shape index: {}]  }
   0x1   :  { %v15_v0 = vld [vmem:[%s157_s0] sm:$0xff]  ;;  %v16_v1 = vld [vmem:[%s157_s0 + $0x8] sm:$0xff] }
   0x2   :  { %8 = vsyncpa [#allocation3], 0  ;;  %v17_v2 = vadd.f32 %v16_v1, %v15_v0  ;;  %v119_v3 = vmov 256.0   ;;  %v120_v17 = vmov 0   ;;  %v47_v27 = vld [vmem:[%s158_s1] sm:$0xff]  ;;  %s121_s19 = smov [#allocation2]  }
   0x3   :  { %89 = vrcp.f32 %v119_v3  ;;  %87 = vset.pattern.permute.xlu1 %v120_v17  ;;  %88 = vset.pattern.permute.xlu0 %v120_v17  ;;  %v49_v31 = vld [vmem:[%s159_s2] sm:$0xff]  ;;  %s73_s20 = sshll.u32 %s121_s19, 4  ;;  %s75_s1 = sshll.u32 %s160_s3, 4  ;;  %s74_s20 = int_to_ptr.vmem [resolvable:$true] %s73_s20  ;;  %s76_s1 = int_to_ptr.hbm [resolvable:$true] %s75_s1 }
   0x4   :  { %18 = vadd.xlane.f32.xlu0 %v17_v2 }
   0x9   :  { %v90_v4 = vpop.eup %89 }
   0xa   :  { %v21_v5 = vmul.f32 256.0, %v90_v4  ;;  %vm25_vm0 = vweird.f32 %v90_v4 }
   0xc   :  { %v22_v6 = vsub.f32 1.0, %v21_v5 }
   0xe   :  { %v23_v7 = vmul.f32 %v90_v4, %v22_v6 }
  0x10   :  { %v24_v8 = vadd.f32 %v90_v4, %v23_v7 }
  0x12   :  { %v26_v9 = vsel %vm25_vm0, %v90_v4, %v24_v8 }
  0x77   :  { %v19_v10 = vpop.xlane.xlu0 %18 }
  0x78   :  { %v27_v11 = vmul.f32 %v26_v9, %v19_v10 }
  0x7a   :  { %v28_v12 = vsub.f32 %v15_v0, %v27_v11  ;;  %v29_v13 = vsub.f32 %v16_v1, %v27_v11 }
  0x7c   :  { %v30_v14 = vmul.f32 %v28_v12, %v28_v12  ;;  %v31_v15 = vmul.f32 %v29_v13, %v29_v13 }
  0x7e   :  { %v32_v16 = vadd.f32 %v31_v15, %v30_v14 }
  0x80   :  { %33 = vadd.xlane.f32.xlu0 %v32_v16 }
  0xf3   :  { %v34_v18 = vpop.xlane.xlu0 %33 }
  0xf4   :  { %v35_v19 = vmul.f32 %v34_v18, %v26_v9 }
  0xf6   :  { %v36_v20 = vadd.f32 1e-05, %v35_v19 }
  0xf8   :  { %91 = vrsqrt.f32 %v36_v20  ;;  %vm43_vm2 = vweird.f32 %v36_v20 }
  0xfe   :  { %v92_v21 = vpop.eup %91 }
  0xff   :  { %v38_v22 = vmul.f32 %v92_v21, %v36_v20  ;;  %vm44_vm1 = vweird.f32 %v92_v21 }
 0x100   :  { %vm45_vm3 = vmor %vm43_vm2, %vm44_vm1 }
 0x101   :  { %v39_v23 = vmul.f32 %v92_v21, %v38_v22 }
 0x103   :  { %v40_v24 = vmul.f32 0.5, %v39_v23 }
 0x105   :  { %v41_v25 = vsub.f32 1.5, %v40_v24 }
 0x107   :  { %v42_v26 = vmul.f32 %v92_v21, %v41_v25 }
 0x109   :  { %v46_v28 = vsel %vm45_vm3, %v92_v21, %v42_v26 }
 0x10a   :  { %v48_v29 = vmul.f32 %v47_v27, %v46_v28 }
 0x10c   :  { %54 = vperm.xlu1 %87, %v48_v29   ;;  %v50_v30 = vmul.f32 %v48_v29, %v27_v11 }
 0x10e   :  { %v51_v32 = vsub.f32 %v49_v31, %v50_v30 }
 0x114   :  { %61 = vperm.xlu1 %87, %v51_v32  }
 0x17e   :  { %v55_v33 = vpop.permute.xlu1 %54 }
 0x17f   :  { %v57_v34 = vmul.f32 %v55_v33, %v15_v0  ;;  %v58_v35 = vmul.f32 %v55_v33, %v16_v1 }
 0x186   :  { %v62_v36 = vpop.permute.xlu1 %61 }
 0x187   :  { %v64_v37 = vadd.f32 %v62_v36, %v57_v34  ;;  %v65_v38 = vadd.f32 %v62_v36, %v58_v35 }
 0x189   :  { %66 = vst [vmem:[#allocation2] sm:$0xff] %v64_v37 }
 0x18a   :  { %67 = vst [vmem:[#allocation2 + $0x8] sm:$0xff] %v65_v38 }
 0x18b   :  { %78 = dma.vmem_to_hbm [thread:$0]  %s74_s20, 256, %s76_s1, [#allocation3]  }
 0x18c   :  { %117 = dma.done.wait [#allocation3], 256  }
 0x18d   :  { %118 = vsyncadd [#allocation3], 4294967040 }
 0x18e   :  { %83 = vsyncpa [#allocation3], 1 }

</bundles_post_ra>
